<compile_context>
chip_gen: v7x
topology: tpu7x:2x2x1
jax: 0.10.0
libtpu: 0.0.40
codegen_flags: <defaults>
</compile_context>

<pallas_src>
import jax
import jax.numpy as jnp
from jax.experimental import pallas as pl
from jax.experimental.pallas import tpu as pltpu

LANES = 128  # lane-dense padding target for kernel-facing channel/hidden/class dims


# -----------------------------------------------------------------------------
# Fused kernel: per grid step, a block of B images.
#   feat   = relu( im2col(B*HW, 32) @ Wc(32,128) + bc )          # backbone conv
#   pooled = mean_HW(feat)                                       # fused global pool
#   h      = relu( pooled @ W1g + pair_box @ W1b + b1 )          # head layer 1
#   out    = sigmoid( h @ W2 + b2 )                              # head layer 2
# pooled/feat/h live entirely in VMEM; only the (B, NP, 128) score slab is stored.
# -----------------------------------------------------------------------------

def _make_fused_kernel(B, HW, NP):
    def kernel(xc_ref, pb_ref, wc_ref, bc_ref, w1g_ref, w1b_ref, b1_ref,
               w2_ref, b2_ref, o_ref):
        Kc = wc_ref.shape[0]
        Cp = wc_ref.shape[-1]

        # --- backbone: single im2col matmul (M = B*HW, K = Kc) ---
        xc = xc_ref[...].reshape(B * HW, Kc)                       # bf16
        feat = jnp.dot(xc, wc_ref[...], preferred_element_type=jnp.float32)
        feat = jnp.maximum(feat + bc_ref[...], 0.0)                # (B*HW, 128) f32
        pooled = jnp.mean(feat.reshape(B, HW, Cp), axis=1)         # (B, 128) f32

        # --- interaction head (hidden padded to 128 lanes) ---
        gW = jnp.dot(pooled.astype(jnp.bfloat16), w1g_ref[...],
                     preferred_element_type=jnp.float32)           # (B, 128), per image
        pb = pb_ref[...].reshape(B * NP, pb_ref.shape[-1]).astype(jnp.bfloat16)
        hb = jnp.dot(pb, w1b_ref[...],
                     preferred_element_type=jnp.float32)           # (B*NP, 128)
        h = jnp.maximum(hb.reshape(B, NP, Cp) + gW[:, None, :] + b1_ref[...], 0.0)
        logits = jnp.dot(h.reshape(B * NP, Cp).astype(jnp.bfloat16), w2_ref[...],
                         preferred_element_type=jnp.float32) + b2_ref[...]
        o_ref[...] = jax.nn.sigmoid(logits).reshape(B, NP, Cp)     # lane-dense store
    return kernel


def fused_forward(x_cols, pair_box, wconv, bconv, w1g, w1b, b1, w2, b2, *, grid_n):
    """x_cols: (N, HW, Kc) bf16 im2col slab; pair_box: (N, NP, 8) f32;
    weights lane-padded to 128.  Returns (N, NP, 128) f32 padded scores."""
    N, HW, Kc = x_cols.shape
    _, NP, Fb = pair_box.shape
    Cp = wconv.shape[-1]
    B = N // grid_n
    return pl.pallas_call(
        _make_fused_kernel(B, HW, NP),
        out_shape=jax.ShapeDtypeStruct((N, NP, Cp), jnp.float32),
        grid=(grid_n,),
        in_specs=[
            pl.BlockSpec((B, HW, Kc), lambda g: (g, 0, 0)),
            pl.BlockSpec((B, NP, Fb), lambda g: (g, 0, 0)),
            pl.BlockSpec((Kc, Cp), lambda g: (0, 0)),
            pl.BlockSpec((1, Cp), lambda g: (0, 0)),
            pl.BlockSpec((Cp, Cp), lambda g: (0, 0)),
            pl.BlockSpec((Fb, Cp), lambda g: (0, 0)),
            pl.BlockSpec((1, Cp), lambda g: (0, 0)),
            pl.BlockSpec((Cp, Cp), lambda g: (0, 0)),
            pl.BlockSpec((1, Cp), lambda g: (0, 0)),
        ],
        out_specs=pl.BlockSpec((B, NP, Cp), lambda g: (g, 0, 0)),
        compiler_params=pltpu.CompilerParams(dimension_semantics=("parallel",)),
    )(x_cols, pair_box, wconv, bconv, w1g, w1b, b1, w2, b2)


# -----------------------------------------------------------------------------
# GenericHOINetwork (synthetic backbone / interaction head / transform)
# -----------------------------------------------------------------------------

class GenericHOINetworkPallas:
    """preprocess (transform + box relocation) -> backbone -> interaction head
    -> postprocess (rescale boxes to original image size)."""

    def __init__(self, key, *, in_channels=3, backbone_channels=32, hidden=64,
                 num_classes=16, target_size=(16, 16)):
        self.target_size = target_size
        self.num_classes = num_classes
        self.backbone_channels = backbone_channels
        k1, k2, k3 = jax.random.split(key, 3)

        kk = 3
        self.kk = kk
        conv_w = jax.random.normal(
            k1, (kk, kk, in_channels, backbone_channels), jnp.float32) * 0.1
        conv_b = jnp.zeros((backbone_channels,), jnp.float32)

        # ImageNet-style normalization constants, folded into the conv:
        #   conv(zero_pad((x-mean)/std)) == conv'(mean_pad(x))
        #   with w' = w*scale (per in-channel), b' = b + sum_taps w . shift
        mean = jnp.array([0.485, 0.456, 0.406], jnp.float32)[:in_channels]
        std = jnp.array([0.229, 0.224, 0.225], jnp.float32)[:in_channels]
        self.pix_mean = mean
        scale = 1.0 / std
        shift = -mean / std
        w_fold = conv_w * scale[None, None, :, None]
        b_fold = conv_b + jnp.einsum("ijco,c->o", conv_w, shift)

        # Single im2col weight slab: (kk*kk*Cin, Cout) with K padded to a multiple
        # of 8 (27 -> 32) and Cout padded to 128 lanes.  Padded rows/cols are zero.
        k_raw = kk * kk * in_channels
        self.k_pad = ((k_raw + 7) // 8) * 8
        pad_c = LANES - backbone_channels
        w_flat = w_fold.reshape(k_raw, backbone_channels)
        self.conv_w = jnp.pad(w_flat, ((0, self.k_pad - k_raw), (0, pad_c))
                              ).astype(jnp.bfloat16)                      # (32, 128)
        self.conv_b = jnp.pad(b_fold, ((0, pad_c),)).reshape(1, LANES)    # (1, 128) f32

        # Interaction head MLP: [global_feat | sub_box | obj_box] -> hidden -> classes
        # Hidden padded 64 -> 128, classes padded 16 -> 128 (all padding zero-filled).
        feat_dim = backbone_channels + 8
        w1 = jax.random.normal(k2, (feat_dim, hidden), jnp.float32) * 0.1
        w2 = jax.random.normal(k3, (hidden, num_classes), jnp.float32) * 0.1
        b1 = jnp.zeros((hidden,), jnp.float32)
        b2 = jnp.zeros((num_classes,), jnp.float32)

        hp, cp = LANES - hidden, LANES - num_classes
        self.w1_g = jnp.pad(w1[:backbone_channels],
                            ((0, LANES - backbone_channels), (0, hp))
                            ).astype(jnp.bfloat16)                        # (128, 128)
        self.w1_b = jnp.pad(w1[backbone_channels:], ((0, 0), (0, hp))
                            ).astype(jnp.bfloat16)                        # (8, 128)
        self.b1 = jnp.pad(b1, ((0, hp),)).reshape(1, LANES)               # (1, 128) f32
        self.w2 = jnp.pad(w2, ((0, hp), (0, cp))).astype(jnp.bfloat16)    # (128, 128)
        self.b2 = jnp.pad(b2, ((0, cp),)).reshape(1, LANES)               # (1, 128) f32

        # jit the shape-static cores (resize + im2col + pallas_call + box math).
        self._jit_raw = jax.jit(self._core_from_raw)
        self._jit_resized = jax.jit(self._core_resized)

    # ---- batched box helpers (reference semantics) ----
    @staticmethod
    def _process_boxes(boxes, scales, fill, nudge):
        """boxes (N,K,4); scales (N,1,4).  Resize valid boxes, replace empty (-1)
        rows with the fill box, and nudge boxes exactly equal to the degenerate
        full-image box (matches the PyTorch reference's torch.equal check)."""
        valid = jnp.all(boxes != -1.0, axis=-1)                     # (N, K)
        resized = boxes * scales
        degen = jnp.all(resized == fill, axis=-1, keepdims=True)
        resized = jnp.where(degen, nudge, resized)
        out = jnp.where(valid[..., None], resized, fill)
        return out, valid

    # ---- jitted cores ----
    def _core_from_raw(self, x_raw_nchw, sub, obj, scales_in, scales_back):
        """Batched transform (resize) fused into the jitted core (same-sized images)."""
        th, tw = self.target_size
        C = x_raw_nchw.shape[1]
        x = jax.vmap(lambda im: jax.image.resize(im, (C, th, tw), method="linear")
                     )(x_raw_nchw)
        return self._core_resized(x, sub, obj, scales_in, scales_back)

    def _core_resized(self, x_nchw, sub, obj, scales_in, scales_back):
        th, tw = self.target_size
        N, C = x_nchw.shape[:2]
        kk = self.kk
        pad = kk // 2
        x = jnp.transpose(x_nchw, (0, 2, 3, 1)).astype(jnp.float32)       # NHWC

        # Mean-valued border padding (exact counterpart of the normalization fold).
        xp = jnp.broadcast_to(self.pix_mean,
                              (N, th + 2 * pad, tw + 2 * pad, C)).astype(jnp.float32)
        xp = xp.at[:, pad:pad + th, pad:pad + tw, :].set(x)

        # Lane-/DMA-friendly im2col slab (N, HW, kk*kk*C -> 32) in bf16 (~16 KB/img).
        taps = [xp[:, di:di + th, dj:dj + tw, :]
                for di in range(kk) for dj in range(kk)]
        cols = jnp.stack(taps, axis=3).reshape(N, th * tw, kk * kk * C)
        cols = jnp.pad(cols, ((0, 0), (0, 0), (0, self.k_pad - kk * kk * C))
                       ).astype(jnp.bfloat16)

        # Box relocation (reference semantics, fully batched).
        fill_s = jnp.array([0., 0., tw - 1, th], jnp.float32)
        nud_s = jnp.array([0., 0., tw - 2, th], jnp.float32)
        fill_o = jnp.array([0., 0., tw, th - 1], jnp.float32)
        nud_o = jnp.array([0., 0., tw - 1, th - 2], jnp.float32)
        sub_b, valid_s = self._process_boxes(sub, scales_in, fill_s, nud_s)
        obj_b, valid_o = self._process_boxes(obj, scales_in, fill_o, nud_o)

        # Pair features (batched, no per-image Python loop).
        NS, NO = sub_b.shape[1], obj_b.shape[1]
        NP = NS * NO
        sb_pair = jnp.broadcast_to(sub_b[:, :, None, :], (N, NS, NO, 4)).reshape(N, NP, 4)
        ob_pair = jnp.broadcast_to(obj_b[:, None, :, :], (N, NS, NO, 4)).reshape(N, NP, 4)
        mask = (valid_s[:, :, None] & valid_o[:, None, :]).reshape(N, NP, 1)
        mask = mask.astype(jnp.float32)
        norm = jnp.array([tw, th, tw, th], jnp.float32)
        pair_box = jnp.concatenate([sb_pair / norm, ob_pair / norm], axis=-1)  # (N,NP,8)

        # Fused backbone + head kernel.  Keep a 2-way "parallel" grid axis when the
        # batch splits evenly (v7x dual TensorCores); else a single step.
        grid_n = 2 if (N >= 2 and N % 2 == 0) else 1
        scores_pad = fused_forward(cols, pair_box, self.conv_w, self.conv_b,
                                   self.w1_g, self.w1_b, self.b1, self.w2, self.b2,
                                   grid_n=grid_n)
        scores = scores_pad[..., :self.num_classes] * mask          # mask in wrapper

        # postprocess: rescale pair boxes back to original image sizes.
        boxes_s = sb_pair * scales_back
        boxes_o = ob_pair * scales_back
        return boxes_s, boxes_o, scores

    # ---- forward ----
    def forward(self, images, detections, targets=None):
        # TODO(synk): training-mode target mutation from the reference preprocess
        # is not implemented (inference path only).
        original_image_sizes = [tuple(int(s) for s in img.shape[-2:]) for img in images]
        th, tw = self.target_size
        C = images[0].shape[0]

        sub = jnp.stack([d["subject_boxes"] for d in detections]).astype(jnp.float32)
        obj = jnp.stack([d["object_boxes"] for d in detections]).astype(jnp.float32)
        scales_in = jnp.array(
            [[tw / ow, th / oh, tw / ow, th / oh] for (oh, ow) in original_image_sizes],
            jnp.float32)[:, None, :]
        scales_back = jnp.array(
            [[ow / tw, oh / th, ow / tw, oh / th] for (oh, ow) in original_image_sizes],
            jnp.float32)[:, None, :]

        if all(img.shape == images[0].shape for img in images):
            # transform (bilinear resize) runs batched INSIDE the jitted core.
            x_raw = jnp.stack(images).astype(jnp.float32)            # (N, C, H, W)
            boxes_s, boxes_o, scores = self._jit_raw(
                x_raw, sub, obj, scales_in, scales_back)
        else:
            # heterogeneous image sizes: per-image resize, rest stays jitted.
            resized = [jax.image.resize(img.astype(jnp.float32), (C, th, tw),
                                        method="linear") for img in images]
            boxes_s, boxes_o, scores = self._jit_resized(
                jnp.stack(resized), sub, obj, scales_in, scales_back)

        results = []
        for n in range(len(images)):      # packaging only
            results.append({"boxes_s": boxes_s[n], "boxes_o": boxes_o[n],
                            "scores": scores[n]})
        return results


# -----------------------------------------------------------------------------
# main
# -----------------------------------------------------------------------------

if __name__ == "__main__":
    key = jax.random.PRNGKey(0)
    k_img, k_box, k_params = jax.random.split(key, 3)

    N, C, H, W = 2, 3, 32, 32       # original images (resized to 16x16 by transform)
    NS, NO = 8, 8                   # subject / object boxes per image

    img_keys = jax.random.split(k_img, N)
    images = [jax.random.uniform(k, (C, H, W), jnp.float32) for k in img_keys]

    box_keys = jax.random.split(k_box, 2 * N)
    detections = []
    for n in range(N):
        sb = jax.random.uniform(box_keys[2 * n], (NS, 4), jnp.float32,
                                minval=0.0, maxval=float(W - 1))
        ob = jax.random.uniform(box_keys[2 * n + 1], (NO, 4), jnp.float32,
                                minval=0.0, maxval=float(W - 1))
        sb = sb.at[-1].set(-1.0)    # mark last box of each set as "empty"
        ob = ob.at[-1].set(-1.0)
        detections.append({"subject_boxes": sb, "object_boxes": ob})

    model = GenericHOINetworkPallas(k_params, in_channels=C, backbone_channels=32,
                                    hidden=64, num_classes=16, target_size=(16, 16))

    results = model.forward(images, detections)
    for res in results:
        jax.block_until_ready(res["scores"])
        jax.block_until_ready(res["boxes_s"])
        jax.block_until_ready(res["boxes_o"])

    assert results[0]["scores"].shape == (NS * NO, 16)
    assert results[0]["boxes_s"].shape == (NS * NO, 4)
    assert results[0]["boxes_o"].shape == (NS * NO, 4)
    print("KERNEL_OK")
</pallas_src>

<mosaic_0001>
module attributes {stable_mosaic.version = 11 : i64} {
  func.func @kernel(%arg0: i32, %arg1: memref<1x256x32xbf16, #tpu.memory_space<vmem>>, %arg2: memref<1x64x8xf32, #tpu.memory_space<vmem>>, %arg3: memref<32x128xbf16, #tpu.memory_space<vmem>>, %arg4: memref<1x128xf32, #tpu.memory_space<vmem>>, %arg5: memref<128x128xbf16, #tpu.memory_space<vmem>>, %arg6: memref<8x128xbf16, #tpu.memory_space<vmem>>, %arg7: memref<1x128xf32, #tpu.memory_space<vmem>>, %arg8: memref<128x128xbf16, #tpu.memory_space<vmem>>, %arg9: memref<1x128xf32, #tpu.memory_space<vmem>>, %arg10: memref<1x64x128xf32, #tpu.memory_space<vmem>>) attributes {dimension_semantics = [#tpu.dimension_semantics<parallel>], iteration_bounds = array<i64: 2>, scalar_prefetch = 0 : i64, scratch_operands = 0 : i64, tpu.core_type = #tpu.core_type<tc>, window_params = [{transform_indices = @transform_0, window_bounds = array<i64: 1, 256, 32>}, {transform_indices = @transform_1, window_bounds = array<i64: 1, 64, 8>}, {pipeline_mode = #tpu.pipeline_mode<synchronous>, transform_indices = @transform_2, window_bounds = array<i64: 32, 128>}, {pipeline_mode = #tpu.pipeline_mode<synchronous>, transform_indices = @transform_3, window_bounds = array<i64: 1, 128>}, {pipeline_mode = #tpu.pipeline_mode<synchronous>, transform_indices = @transform_4, window_bounds = array<i64: 128, 128>}, {pipeline_mode = #tpu.pipeline_mode<synchronous>, transform_indices = @transform_5, window_bounds = array<i64: 8, 128>}, {pipeline_mode = #tpu.pipeline_mode<synchronous>, transform_indices = @transform_6, window_bounds = array<i64: 1, 128>}, {pipeline_mode = #tpu.pipeline_mode<synchronous>, transform_indices = @transform_7, window_bounds = array<i64: 128, 128>}, {pipeline_mode = #tpu.pipeline_mode<synchronous>, transform_indices = @transform_8, window_bounds = array<i64: 1, 128>}, {transform_indices = @transform_9, window_bounds = array<i64: 1, 64, 128>}]} {
    %c0 = arith.constant 0 : index
    %c0_0 = arith.constant 0 : index
    %c0_1 = arith.constant 0 : index
    %0 = vector.load %arg1[%c0, %c0_0, %c0_1] : memref<1x256x32xbf16, #tpu.memory_space<vmem>>, vector<1x256x32xbf16>
    %1 = vector.shape_cast %0 : vector<1x256x32xbf16> to vector<256x32xbf16>
    %c0_2 = arith.constant 0 : index
    %c0_3 = arith.constant 0 : index
    %2 = vector.load %arg3[%c0_2, %c0_3] : memref<32x128xbf16, #tpu.memory_space<vmem>>, vector<32x128xbf16>
    %cst = arith.constant dense<0.000000e+00> : vector<256x128xf32>
    %3 = tpu.matmul %1, %2, %cst {dimension_numbers = #tpu.dot_dimension_numbers<[1], [0], [0], [1], [0, 0, 1, 1], [], []>} : vector<256x32xbf16>, vector<32x128xbf16>, vector<256x128xf32> -> vector<256x128xf32>
    %c0_4 = arith.constant 0 : index
    %c0_5 = arith.constant 0 : index
    %4 = vector.load %arg4[%c0_4, %c0_5] : memref<1x128xf32, #tpu.memory_space<vmem>>, vector<1x128xf32>
    %5 = vector.broadcast %4 : vector<1x128xf32> to vector<256x128xf32>
    %6 = arith.addf %3, %5 : vector<256x128xf32>
    %cst_6 = arith.constant 0.000000e+00 : f32
    %7 = vector.broadcast %cst_6 : f32 to vector<256x128xf32>
    %8 = arith.maximumf %6, %7 : vector<256x128xf32>
    %9 = vector.shape_cast %8 : vector<256x128xf32> to vector<1x256x128xf32>
    %cst_7 = arith.constant dense<0.000000e+00> : vector<1x128xf32>
    %10 = vector.multi_reduction <add>, %9, %cst_7 [1] : vector<1x256x128xf32> to vector<1x128xf32>
    %cst_8 = arith.constant 2.560000e+02 : f32
    %11 = vector.broadcast %cst_8 : f32 to vector<1x128xf32>
    %12 = arith.divf %10, %11 : vector<1x128xf32>
    %13 = arith.truncf %12 : vector<1x128xf32> to vector<1x128xbf16>
    %c0_9 = arith.constant 0 : index
    %c0_10 = arith.constant 0 : index
    %14 = vector.load %arg5[%c0_9, %c0_10] : memref<128x128xbf16, #tpu.memory_space<vmem>>, vector<128x128xbf16>
    %cst_11 = arith.constant dense<0.000000e+00> : vector<1x128xf32>
    %15 = tpu.matmul %13, %14, %cst_11 {dimension_numbers = #tpu.dot_dimension_numbers<[1], [0], [0], [1], [0, 0, 1, 1], [], []>} : vector<1x128xbf16>, vector<128x128xbf16>, vector<1x128xf32> -> vector<1x128xf32>
    %c0_12 = arith.constant 0 : index
    %c0_13 = arith.constant 0 : index
    %c0_14 = arith.constant 0 : index
    %16 = vector.load %arg2[%c0_12, %c0_13, %c0_14] : memref<1x64x8xf32, #tpu.memory_space<vmem>>, vector<1x64x8xf32>
    %17 = vector.shape_cast %16 : vector<1x64x8xf32> to vector<64x8xf32>
    %18 = arith.truncf %17 : vector<64x8xf32> to vector<64x8xbf16>
    %c0_15 = arith.constant 0 : index
    %c0_16 = arith.constant 0 : index
    %19 = vector.load %arg6[%c0_15, %c0_16] : memref<8x128xbf16, #tpu.memory_space<vmem>>, vector<8x128xbf16>
    %cst_17 = arith.constant dense<0.000000e+00> : vector<64x128xf32>
    %20 = tpu.matmul %18, %19, %cst_17 {dimension_numbers = #tpu.dot_dimension_numbers<[1], [0], [0], [1], [0, 0, 1, 1], [], []>} : vector<64x8xbf16>, vector<8x128xbf16>, vector<64x128xf32> -> vector<64x128xf32>
    %21 = vector.shape_cast %20 : vector<64x128xf32> to vector<1x64x128xf32>
    %22 = vector.shape_cast %15 : vector<1x128xf32> to vector<1x1x128xf32>
    %23 = vector.broadcast %22 : vector<1x1x128xf32> to vector<1x64x128xf32>
    %24 = arith.addf %21, %23 : vector<1x64x128xf32>
    %c0_18 = arith.constant 0 : index
    %c0_19 = arith.constant 0 : index
    %25 = vector.load %arg7[%c0_18, %c0_19] : memref<1x128xf32, #tpu.memory_space<vmem>>, vector<1x128xf32>
    %26 = vector.shape_cast %25 : vector<1x128xf32> to vector<1x1x128xf32>
    %27 = vector.broadcast %26 : vector<1x1x128xf32> to vector<1x64x128xf32>
    %28 = arith.addf %24, %27 : vector<1x64x128xf32>
    %cst_20 = arith.constant 0.000000e+00 : f32
    %29 = vector.broadcast %cst_20 : f32 to vector<1x64x128xf32>
    %30 = arith.maximumf %28, %29 : vector<1x64x128xf32>
    %31 = vector.shape_cast %30 : vector<1x64x128xf32> to vector<64x128xf32>
    %32 = arith.truncf %31 : vector<64x128xf32> to vector<64x128xbf16>
    %c0_21 = arith.constant 0 : index
    %c0_22 = arith.constant 0 : index
    %33 = vector.load %arg8[%c0_21, %c0_22] : memref<128x128xbf16, #tpu.memory_space<vmem>>, vector<128x128xbf16>
    %cst_23 = arith.constant dense<0.000000e+00> : vector<64x128xf32>
    %34 = tpu.matmul %32, %33, %cst_23 {dimension_numbers = #tpu.dot_dimension_numbers<[1], [0], [0], [1], [0, 0, 1, 1], [], []>} : vector<64x128xbf16>, vector<128x128xbf16>, vector<64x128xf32> -> vector<64x128xf32>
    %c0_24 = arith.constant 0 : index
    %c0_25 = arith.constant 0 : index
    %35 = vector.load %arg9[%c0_24, %c0_25] : memref<1x128xf32, #tpu.memory_space<vmem>>, vector<1x128xf32>
    %36 = vector.broadcast %35 : vector<1x128xf32> to vector<64x128xf32>
    %37 = arith.addf %34, %36 : vector<64x128xf32>
    %38 = arith.negf %37 : vector<64x128xf32>
    %39 = math.exp %38 : vector<64x128xf32>
    %cst_26 = arith.constant 1.000000e+00 : f32
    %40 = vector.broadcast %cst_26 : f32 to vector<64x128xf32>
    %41 = arith.addf %40, %39 : vector<64x128xf32>
    %42 = arith.divf %40, %41 : vector<64x128xf32>
    %43 = vector.shape_cast %42 : vector<64x128xf32> to vector<1x64x128xf32>
    %c0_27 = arith.constant 0 : index
    %c0_28 = arith.constant 0 : index
    %c0_29 = arith.constant 0 : index
    %44 = vector.load %arg10[%c0_27, %c0_28, %c0_29] : memref<1x64x128xf32, #tpu.memory_space<vmem>>, vector<1x64x128xf32>
    tpu.vector_store %arg10[%c0_27, %c0_28, %c0_29], %43 {strides = array<i32>} : memref<1x64x128xf32, #tpu.memory_space<vmem>>, vector<1x64x128xf32>,
    return
  }
  func.func @transform_0(%arg0: i32) -> (i32, i32, i32) {
    %c0_i32 = arith.constant 0 : i32
    %c0_i32_0 = arith.constant 0 : i32
    %c0_i32_1 = arith.constant 0 : i32
    return %arg0, %c0_i32, %c0_i32_0 : i32, i32, i32
  }
  func.func @transform_1(%arg0: i32) -> (i32, i32, i32) {
    %c0_i32 = arith.constant 0 : i32
    %c0_i32_0 = arith.constant 0 : i32
    %c0_i32_1 = arith.constant 0 : i32
    return %arg0, %c0_i32, %c0_i32_0 : i32, i32, i32
  }
  func.func @transform_2(%arg0: i32) -> (i32, i32) {
    %c0_i32 = arith.constant 0 : i32
    %c0_i32_0 = arith.constant 0 : i32
    %c0_i32_1 = arith.constant 0 : i32
    return %c0_i32, %c0_i32_0 : i32, i32
  }
  func.func @transform_3(%arg0: i32) -> (i32, i32) {
    %c0_i32 = arith.constant 0 : i32
    %c0_i32_0 = arith.constant 0 : i32
    %c0_i32_1 = arith.constant 0 : i32
    return %c0_i32, %c0_i32_0 : i32, i32
  }
  func.func @transform_4(%arg0: i32) -> (i32, i32) {
    %c0_i32 = arith.constant 0 : i32
    %c0_i32_0 = arith.constant 0 : i32
    %c0_i32_1 = arith.constant 0 : i32
    return %c0_i32, %c0_i32_0 : i32, i32
  }
  func.func @transform_5(%arg0: i32) -> (i32, i32) {
    %c0_i32 = arith.constant 0 : i32
    %c0_i32_0 = arith.constant 0 : i32
    %c0_i32_1 = arith.constant 0 : i32
    return %c0_i32, %c0_i32_0 : i32, i32
  }
  func.func @transform_6(%arg0: i32) -> (i32, i32) {
    %c0_i32 = arith.constant 0 : i32
    %c0_i32_0 = arith.constant 0 : i32
    %c0_i32_1 = arith.constant 0 : i32
    return %c0_i32, %c0_i32_0 : i32, i32
  }
  func.func @transform_7(%arg0: i32) -> (i32, i32) {
    %c0_i32 = arith.constant 0 : i32
    %c0_i32_0 = arith.constant 0 : i32
    %c0_i32_1 = arith.constant 0 : i32
    return %c0_i32, %c0_i32_0 : i32, i32
  }
  func.func @transform_8(%arg0: i32) -> (i32, i32) {
    %c0_i32 = arith.constant 0 : i32
    %c0_i32_0 = arith.constant 0 : i32
    %c0_i32_1 = arith.constant 0 : i32
    return %c0_i32, %c0_i32_0 : i32, i32
  }
  func.func @transform_9(%arg0: i32) -> (i32, i32, i32) {
    %c0_i32 = arith.constant 0 : i32
    %c0_i32_0 = arith.constant 0 : i32
    %c0_i32_1 = arith.constant 0 : i32
    return %arg0, %c0_i32, %c0_i32_0 : i32, i32, i32
  }
}

</mosaic_0001>

<bundles_post_ra>
// kernel: _core_from_raw.1
= control target key start
LH: loop header
LB: loop body
LE: loop exit
PB: predicated region body
PF: predicated region fallthrough
CT: control target
= control target key end

     0   :  { %s1624_s30 = smov 0   ;;  %s1798_s0 = inlined_call_operand.vmem [shape: bf16[2,256,32], index: 0, kind: input, shape index: {}]   ;;  %s1799_s1 = inlined_call_operand.vmem [shape: f32[2,64,8], index: 1, kind: input, shape index: {}]   ;;  %s1800_s2 = inlined_call_operand.vmem [shape: bf16[32,128], index: 2, kind: input, shape index: {}]   ;;  %s1801_s3 = inlined_call_operand.vmem [shape: f32[1,128], index: 3, kind: input, shape index: {}]   ;;  %s1802_s4 = inlined_call_operand.vmem [shape: bf16[128,128], index: 4, kind: input, shape index: {}]   ;;  %s1803_s5 = inlined_call_operand.vmem [shape: bf16[8,128], index: 5, kind: input, shape index: {}]   ;;  %s1804_s6 = inlined_call_operand.vmem [shape: f32[1,128], index: 6, kind: input, shape index: {}, may-alias: {6,8}]   ;;  %s1805_s7 = inlined_call_operand.vmem [shape: bf16[128,128], index: 7, kind: input, shape index: {}]   ;;  %s1806_s8 = inlined_call_operand.vmem [shape: f32[1,128], index: 8, kind: input, shape index: {}, may-alias: {6,8}]   ;;  %s1807_s9 = inlined_call_operand.vmem [shape: f32[2,64,128], index: 9, kind: output, shape index: {}]  }
   0x1 LB: > { %s1268_s10 = sadd.s32 4294967295, %s1570_s30   ;;  %p1272_p0 = scmp.ge.s32.totalorder %s1570_s30, 1  ;;  %s1570_s30 = sphi %s1624_s30, %s19_s30  }
   0x2   : > { %p297_p1 = scmp.lt.s32.totalorder %s1570_s30, 3 }
   0x4   : > { %p298_p2 = pnand %p1272_p0, %p297_p1 }
   0x5   : > { %v1498_v0 = vld [vmem:[%s1800_s2] sm:$0xff] (!%p298_p2)   ;;  %p338_p3 = scmp.lt.s32.totalorder (!%p298_p2), %s1268_s10, 1  ;;  %v1499_v1 = vld [vmem:[%s1800_s2 + $0x8] sm:$0xff] (!%p298_p2)   ;;  %vm489_vm0 = vcmask (!%p298_p2), 261120   ;;  %v1572_v19 = vmov (!%p298_p2), 0.0   ;;  %v1518_v21 = vld [vmem:[%s1802_s4 + $0x10] sm:$0xff] (!%p298_p2)  }
   0x6   : > { %301 = sbr.rel (%p298_p2) target bundleno = 799 (0x31f), region = 56  ;;  %1393 = vmatprep.subr.bf16.mxu0 (!%p298_p2), %v1498_v0  ;;  %1483 = vmatprep.subr.bf16.mxu1 (!%p298_p2), %v1498_v0  ;;  %v1516_v18 = vld [vmem:[%s1802_s4] sm:$0xff] (!%p298_p2)   ;;  %v1517_v20 = vld [vmem:[%s1802_s4 + $0x8] sm:$0xff] (!%p298_p2)   ;;  %v1519_v22 = vld [vmem:[%s1802_s4 + $0x18] sm:$0xff] (!%p298_p2)   ;;  %vm1573_vm1 = vmmov (!%p298_p2), 0   ;;  %vm901_vm2 = vcmask (!%p298_p2), 1043456  }
   0x7   : > { %1394 = vmatpush3.bf16.msra.mxu0 (!%p298_p2), %v1498_v0  ;;  %1485 = vmatpush3.bf16.msra.mxu1 (!%p298_p2), %v1498_v0  ;;  %v1520_v23 = vld [vmem:[%s1802_s4 + $0x20] sm:$0xff] (!%p298_p2)   ;;  %v1521_v24 = vld [vmem:[%s1802_s4 + $0x28] sm:$0xff] (!%p298_p2)   ;;  %v1522_v25 = vld [vmem:[%s1802_s4 + $0x30] sm:$0xff] (!%p298_p2)   ;;  %vm888_vm3 = vcmask (!%p298_p2), 64512  }
   0x8   : > { %1395 = vmatprep.subr.bf16.mxu0 (!%p298_p2), %v1499_v1  ;;  %1484 = vmatprep.subr.bf16.mxu1 (!%p298_p2), %v1499_v1  ;;  %v1523_v26 = vld [vmem:[%s1802_s4 + $0x38] sm:$0xff] (!%p298_p2)   ;;  %v887_v27 = vld [vmem:[%s1803_s5] sm:$0xf] (!%p298_p2)  ;;  %v1525_v30 = vld [vmem:[%s1805_s7 + $0x8] sm:$0xff] (!%p298_p2)  }
   0x9   : > { %v1705_v28 = vsel (!%p298_p2), %vm901_vm2, %v887_v27, 0  ;;  %v1524_v29 = vld [vmem:[%s1805_s7] sm:$0xff] (!%p298_p2)   ;;  %v1526_v31 = vld [vmem:[%s1805_s7 + $0x10] sm:$0xff] (!%p298_p2)  }
   0xa   : > { %v1719_v32 = vld [vmem:[%s1801_s3] ss:$0 sm:$0xff] (!%p298_p2) }
   0xb   : > { %1396 = vmatpush3.bf16.msra.mxu0 (!%p298_p2), %v1499_v1  ;;  %1486 = vmatpush3.bf16.msra.mxu1 (!%p298_p2), %v1499_v1 }
   0xc   : > { %1429 = vmatprep.subr.bf16.mxu1 (!%p298_p2), %v1572_v19  ;;  %1459 = vmatprep.subr.bf16.mxu0 (!%p298_p2), %v1524_v29 }
   0xd   : > { %s1809_s10 = smov (!%p338_p3, %s1268_s10), 1 }
   0xe   : > { %s1346_s15 = sshll.u32 %s1809_s10, 7  ;;  %s1347_s26 = sshll.u32 %s1809_s10, 6 }
   0xf   : > { %s1644_s18 = scalar_lea.vmem %s1798_s0, %s1346_s15  ;;  %s347_s29 = scalar_lea.vmem %s1799_s1, %s1347_s26 }
  0x10   : > { %v1500_v2 = vld [vmem:[%s1644_s18] sm:$0xff]   ;;  %v1501_v3 = vld [vmem:[%s1644_s18 + $0x8] sm:$0xff]   ;;  %v1502_v4 = vld [vmem:[%s1644_s18 + $0x10] sm:$0xff]   ;;  %s352_s28 = scalar_lea.vmem %s1807_s9, %s1347_s26 }
  0x11   : > { %1397 = vmatprep.mubr.msk.bf16.mxu0 %vm489_vm0, %v1500_v2  ;;  %v1503_v5 = vld [vmem:[%s1644_s18 + $0x18] sm:$0xff]   ;;  %v1504_v6 = vld [vmem:[%s1644_s18 + $0x20] sm:$0xff]   ;;  %v1509_v8 = vld [vmem:[%s1644_s18 + $0x48] sm:$0xff]  }
  0x12   : > { %1398 = vmatmul.mubr.msk.bf16.vlgmr.msra.gmra.mrb[0].mxu0 %vm489_vm0, %v1501_v3  ;;  %v1508_v7 = vld [vmem:[%s1644_s18 + $0x40] sm:$0xff]   ;;  %v1510_v9 = vld [vmem:[%s1644_s18 + $0x50] sm:$0xff]   ;;  %v1505_v10 = vld [vmem:[%s1644_s18 + $0x28] sm:$0xff]  }
  0x13   : > { %1401 = vmatprep.mubr.msk.bf16.mxu0 %vm489_vm0, %v1502_v4  ;;  %1413 = vmatprep.mubr.msk.bf16.mxu1 %vm489_vm0, %v1508_v7  ;;  %v1511_v11 = vld [vmem:[%s1644_s18 + $0x58] sm:$0xff]   ;;  %v1506_v12 = vld [vmem:[%s1644_s18 + $0x30] sm:$0xff]   ;;  %v1512_v13 = vld [vmem:[%s1644_s18 + $0x60] sm:$0xff]  }
  0x14   : > { %1414 = vmatmul.mubr.msk.bf16.vlgmr.msra.gmra.mrb[0].mxu1 %vm489_vm0, %v1509_v8  ;;  %v1513_v14 = vld [vmem:[%s1644_s18 + $0x68] sm:$0xff]   ;;  %v1507_v15 = vld [vmem:[%s1644_s18 + $0x38] sm:$0xff]   ;;  %v1514_v16 = vld [vmem:[%s1644_s18 + $0x70] sm:$0xff]   ;;  %1460 = vmatpush3.bf16.msra.mxu0 %v1524_v29 }
  0x15   : > { %1417 = vmatprep.mubr.msk.bf16.mxu1 %vm489_vm0, %v1510_v9  ;;  %v1515_v17 = vld [vmem:[%s1644_s18 + $0x78] sm:$0xff]   ;;  %1430 = vmatpush3.bf16.msra.mxu1 %v1516_v18 }
  0x16   : > { %1431 = vmatprep.subr.bf16.mxu1 %v1572_v19  ;;  %1461 = vmatprep.subr.bf16.mxu0 %v1525_v30 }
  0x18   : > { %1462 = vmatpush3.bf16.msra.mxu0 %v1525_v30 }
  0x19   : > { %1432 = vmatpush3.bf16.msra.mxu1 %v1517_v20  ;;  %1463 = vmatprep.subr.bf16.mxu0 %v1526_v31 }
  0x1a   : > { %1402 = vmatmul.mubr.msk.bf16.gmra.mrb[4].mxu0 %vm489_vm0, %v1503_v5  ;;  %1433 = vmatprep.subr.bf16.mxu1 %v1572_v19 }
  0x1b   : > { %1405 = vmatprep.mubr.msk.bf16.mxu0 %vm489_vm0, %v1504_v6 }
  0x1c   : > { %1418 = vmatmul.mubr.msk.bf16.gmra.mrb[4].mxu1 %vm489_vm0, %v1511_v11  ;;  %1464 = vmatpush3.bf16.msra.mxu0 %v1526_v31 }
  0x1d   : > { %1421 = vmatprep.mubr.msk.bf16.mxu1 %vm489_vm0, %v1512_v13  ;;  %1434 = vmatpush3.bf16.msra.mxu1 %v1518_v21 }
  0x1e   : > { %1435 = vmatprep.subr.bf16.mxu1 %v1572_v19 }
  0x21   : > { %1436 = vmatpush3.bf16.msra.mxu1 %v1519_v22 }
  0x22   : > { %1406 = vmatmul.mubr.msk.bf16.gmra.mrb[8].mxu0 %vm489_vm0, %v1505_v10  ;;  %1437 = vmatprep.subr.bf16.mxu1 %v1572_v19 }
  0x23   : > { %1409 = vmatprep.mubr.msk.bf16.mxu0 %vm489_vm0, %v1506_v12 }
  0x24   : > { %1422 = vmatmul.mubr.msk.bf16.gmra.mrb[8].mxu1 %vm489_vm0, %v1513_v14 }
  0x25   : > { %1425 = vmatprep.mubr.msk.bf16.mxu1 %vm489_vm0, %v1514_v16  ;;  %1438 = vmatpush3.bf16.msra.mxu1 %v1520_v23 }
  0x26   : > { %1439 = vmatprep.subr.bf16.mxu1 %v1572_v19 }
  0x29   : > { %1440 = vmatpush3.bf16.msra.mxu1 %v1521_v24 }
  0x2a   : > { %1410 = vmatmul.mubr.msk.bf16.gmra.mrb[12].mxu0 %vm489_vm0, %v1507_v15  ;;  %1441 = vmatprep.subr.bf16.mxu1 %v1572_v19 }
  0x2c   : > { %1426 = vmatmul.mubr.msk.bf16.gmra.mrb[12].mxu1 %vm489_vm0, %v1515_v17 }
  0x2d   : > { %1442 = vmatpush3.bf16.msra.mxu1 %v1522_v25  ;;  %1445 = vmatprep.mubr.msk.bf16.mxu1 %vm1573_vm1, %v1572_v19 }
  0x2e   : > { %1443 = vmatprep.subr.bf16.mxu1 %v1572_v19 }
  0x31   : > { %1444 = vmatpush3.bf16.msra.mxu1 %v1523_v26 }
  0x32   : > { %1487 = vmatprep.subr.msk.bf16.mxu1 %vm901_vm2, %v887_v27 }
  0xe5   : > { %v1399_v33 = vpop.f32.mrb[0].mxu0 }
  0xe6   : > { %v572_v34 = vpop.f32.mrb[1].mxu0  ;;  %v581_v38 = vadd.f32 %v1399_v33, %v1719_v32 }
  0xe7   : > { %v573_v35 = vadd.f32 %v1719_v32, %v572_v34  ;;  %v1400_v36 = vpop.f32.mrb[2].mxu0  ;;  %v1725_v43 = vpop.f32.mrb[0].mxu1 }
  0xe8   : > { %v575_v37 = vpop.f32.mrb[3].mxu0  ;;  %v584_v41 = vadd.f32 %v1400_v36, %v1719_v32  ;;  %v701_v44 = vmax.f32 %v581_v38, 0.0  ;;  %v636_v47 = vpop.f32.mrb[1].mxu1 }
  0xe9   : > { %v576_v39 = vadd.f32 %v1719_v32, %v575_v37  ;;  %v699_v40 = vmax.f32 %v573_v35, 0.0  ;;  %v1727_v49 = vpop.f32.mrb[2].mxu1 }
  0xea   : > { %v702_v50 = vmax.f32 %v584_v41, 0.0  ;;  %v639_v54 = vpop.f32.mrb[3].mxu1  ;;  %v637_v41 = vadd.f32 %v1719_v32, %v636_v47 }
  0xeb   : > { %v700_v42 = vmax.f32 %v576_v39, 0.0 }
  0xed   : > { %v731_v45 = vadd.f32 %v700_v42, %v699_v40  ;;  %v1403_v46 = vpop.f32.mrb[4].mxu0 }
  0xee   : > { %v588_v48 = vpop.f32.mrb[5].mxu0  ;;  %v597_v56 = vadd.f32 %v1403_v46, %v1719_v32 }
  0xef   : > { %v732_v51 = vadd.f32 %v731_v45, %v701_v44  ;;  %v589_v52 = vadd.f32 %v1719_v32, %v588_v48  ;;  %v1404_v53 = vpop.f32.mrb[6].mxu0  ;;  %v1733_v63 = vpop.f32.mrb[4].mxu1 }
  0xf0   : > { %v591_v55 = vpop.f32.mrb[7].mxu0  ;;  %v600_v61 = vadd.f32 %v1404_v53, %v1719_v32  ;;  %v705_v0 = vmax.f32 %v597_v56, 0.0  ;;  %v652_v3 = vpop.f32.mrb[5].mxu1  ;;  %v640_v53 = vadd.f32 %v1719_v32, %v639_v54  ;;  %v645_v56 = vadd.f32 %v1725_v43, %v1719_v32 }
  0xf1   : > { %v703_v57 = vmax.f32 %v589_v52, 0.0  ;;  %v733_v58 = vadd.f32 %v732_v51, %v702_v50  ;;  %v592_v59 = vadd.f32 %v1719_v32, %v591_v55  ;;  %v1420_v5 = vpop.f32.mrb[6].mxu1  ;;  %v715_v52 = vmax.f32 %v637_v41, 0.0 }
  0xf2   : > { %v706_v6 = vmax.f32 %v600_v61, 0.0  ;;  %v655_v10 = vpop.f32.mrb[7].mxu1  ;;  %v716_v47 = vmax.f32 %v640_v53, 0.0  ;;  %v717_v61 = vmax.f32 %v645_v56, 0.0  ;;  %v661_v54 = vadd.f32 %v1733_v63, %v1719_v32  ;;  %v881_v56 = vld [vmem:[%s347_s29 + $0x30] sm:$0xff] }
  0xf3   : > { %v734_v60 = vadd.f32 %v733_v58, %v703_v57  ;;  %v704_v62 = vmax.f32 %v592_v59, 0.0  ;;  %v648_v59 = vadd.f32 %v1727_v49, %v1719_v32 }
  0xf5   : > { %v735_v1 = vadd.f32 %v734_v60, %v704_v62  ;;  %v1407_v2 = vpop.f32.mrb[8].mxu0  ;;  %v653_v60 = vadd.f32 %v1719_v32, %v652_v3 }
  0xf6   : > { %v604_v4 = vpop.f32.mrb[9].mxu0  ;;  %v613_v12 = vadd.f32 %v1407_v2, %v1719_v32 }
  0xf7   : > { %v736_v7 = vadd.f32 %v735_v1, %v705_v0  ;;  %v605_v8 = vadd.f32 %v1719_v32, %v604_v4  ;;  %v1408_v9 = vpop.f32.mrb[10].mxu0  ;;  %v1423_v19 = vpop.f32.mrb[8].mxu1  ;;  %v718_v0 = vmax.f32 %v648_v59, 0.0  ;;  %v719_v2 = vmax.f32 %v653_v60, 0.0  ;;  %v1527_v59 = vld [vmem:[%s1805_s7 + $0x18] sm:$0xff]   ;;  %v1530_v60 = vld [vmem:[%s1805_s7 + $0x30] sm:$0xff]  }
  0xf8   : > { %v607_v11 = vpop.f32.mrb[11].mxu0  ;;  %v616_v17 = vadd.f32 %v1408_v9, %v1719_v32  ;;  %v709_v20 = vmax.f32 %v613_v12, 0.0  ;;  %v668_v23 = vpop.f32.mrb[9].mxu1  ;;  %v656_v4 = vadd.f32 %v1719_v32, %v655_v10  ;;  %v721_v9 = vmax.f32 %v661_v54, 0.0  ;;  %1465 = vmatprep.subr.bf16.mxu0 %v1527_v59 }
  0xf9   : > { %v707_v13 = vmax.f32 %v605_v8, 0.0  ;;  %v737_v14 = vadd.f32 %v736_v7, %v706_v6  ;;  %v608_v15 = vadd.f32 %v1719_v32, %v607_v11  ;;  %v1424_v25 = vpop.f32.mrb[10].mxu1  ;;  %v664_v7 = vadd.f32 %v1420_v5, %v1719_v32  ;;  %1466 = vmatpush3.bf16.msra.mxu0 %v1527_v59 }
  0xfa   : > { %v710_v26 = vmax.f32 %v616_v17, 0.0  ;;  %v671_v31 = vpop.f32.mrb[11].mxu1  ;;  %v720_v8 = vmax.f32 %v656_v4, 0.0  ;;  %v669_v49 = vadd.f32 %v1719_v32, %v668_v23  ;;  %v680_v63 = vadd.f32 %v1424_v25, %v1719_v32 }
  0xfb   : > { %v738_v16 = vadd.f32 %v737_v14, %v707_v13  ;;  %v708_v18 = vmax.f32 %v608_v15, 0.0  ;;  %v722_v3 = vmax.f32 %v664_v7, 0.0  ;;  %v672_v14 = vadd.f32 %v1719_v32, %v671_v31 }
  0xfc   : > { %v723_v13 = vmax.f32 %v669_v49, 0.0  ;;  %v677_v15 = vadd.f32 %v1423_v19, %v1719_v32 }
  0xfd   : > { %v739_v21 = vadd.f32 %v738_v16, %v708_v18  ;;  %v1411_v22 = vpop.f32.mrb[12].mxu0  ;;  %v724_v17 = vmax.f32 %v672_v14, 0.0 }
  0xfe   : > { %v620_v24 = vpop.f32.mrb[13].mxu0  ;;  %v629_v34 = vadd.f32 %v1411_v22, %v1719_v32  ;;  %v725_v5 = vmax.f32 %v677_v15, 0.0 }
  0xff   : > { %v740_v27 = vadd.f32 %v739_v21, %v709_v20  ;;  %v621_v29 = vadd.f32 %v1719_v32, %v620_v24  ;;  %v1412_v30 = vpop.f32.mrb[14].mxu0  ;;  %v1427_v42 = vpop.f32.mrb[12].mxu1  ;;  %v726_v21 = vmax.f32 %v680_v63, 0.0 }
 0x100   : > { %v623_v33 = vpop.f32.mrb[15].mxu0  ;;  %v632_v39 = vadd.f32 %v1412_v30, %v1719_v32  ;;  %v713_v44 = vmax.f32 %v629_v34, 0.0  ;;  %v684_v46 = vpop.f32.mrb[13].mxu1 }
 0x101   : > { %v711_v35 = vmax.f32 %v621_v29, 0.0  ;;  %v741_v36 = vadd.f32 %v740_v27, %v710_v26  ;;  %v624_v37 = vadd.f32 %v1719_v32, %v623_v33  ;;  %v1428_v48 = vpop.f32.mrb[14].mxu1  ;;  %v685_v18 = vadd.f32 %v1719_v32, %v684_v46 }
 0x102   : > { %v714_v50 = vmax.f32 %v632_v39, 0.0  ;;  %v687_v55 = vpop.f32.mrb[15].mxu1  ;;  %v693_v26 = vadd.f32 %v1427_v42, %v1719_v32  ;;  %v696_v29 = vadd.f32 %v1428_v48, %v1719_v32  ;;  %v875_v42 = vld [vmem:[%s347_s29] sm:$0xff]  ;;  %v877_v48 = vld [vmem:[%s347_s29 + $0x10] sm:$0xff] }
 0x103   : > { %v742_v38 = vadd.f32 %v741_v36, %v711_v35  ;;  %v712_v40 = vmax.f32 %v624_v37, 0.0  ;;  %v727_v23 = vmax.f32 %v685_v18, 0.0  ;;  %v688_v24 = vadd.f32 %v1719_v32, %v687_v55  ;;  %v876_v32 = vld [vmem:[%s347_s29 + $0x8] sm:$0xff] }
 0x104   : > { %v729_v25 = vmax.f32 %v693_v26, 0.0  ;;  %v730_v33 = vmax.f32 %v696_v29, 0.0 }
 0x105   : > { %v743_v45 = vadd.f32 %v742_v38, %v712_v40  ;;  %v728_v30 = vmax.f32 %v688_v24, 0.0 }
 0x107   : > { %v744_v51 = vadd.f32 %v743_v45, %v713_v44  ;;  %v883_v45 = vpack.c.bf16 %v876_v32, %v875_v42  ;;  %v1327_v42 = vld [vmem:[%s1806_s8] ss:$0 sm:$0xff] }
 0x109   : > { %v745_v57 = vadd.f32 %v744_v51, %v714_v50  ;;  %v878_v50 = vld [vmem:[%s347_s29 + $0x18] sm:$0xff]  ;;  %v879_v51 = vld [vmem:[%s347_s29 + $0x20] sm:$0xff] }
 0x10a   : > { %v884_v53 = vpack.c.bf16 %v878_v50, %v877_v48 }
 0x10b   : > { %v746_v58 = vadd.f32 %v745_v57, %v715_v52  ;;  %v880_v52 = vld [vmem:[%s347_s29 + $0x28] sm:$0xff]  ;;  %v882_v57 = vld [vmem:[%s347_s29 + $0x38] sm:$0xff] }
 0x10c   : > { %v885_v55 = vpack.c.bf16 %v880_v52, %v879_v51 }
 0x10d   : > { %v747_v62 = vadd.f32 %v746_v58, %v716_v47  ;;  %v886_v58 = vpack.c.bf16 %v882_v57, %v881_v56  ;;  %v1529_v47 = vld [vmem:[%s1805_s7 + $0x28] sm:$0xff]  }
 0x10f   : > { %v748_v1 = vadd.f32 %v747_v62, %v717_v61  ;;  %v1531_v61 = vld [vmem:[%s1805_s7 + $0x38] sm:$0xff]   ;;  %v970_v62 = vlaneseq }
 0x111   : > { %v749_v6 = vadd.f32 %v748_v1, %v718_v0  ;;  %v971_v0 = vshrl.u32 %v970_v62, 7 }
 0x113   : > { %v750_v43 = vadd.f32 %v749_v6, %v719_v2  ;;  %v972_v54 = vsub.s32 0, %v971_v0 }
 0x115   : > { %v751_v11 = vadd.f32 %v750_v43, %v720_v8  ;;  %v1326_v8 = vld [vmem:[%s1804_s6] ss:$0 sm:$0xff] }
 0x117   : > { %v752_v12 = vadd.f32 %v751_v11, %v721_v9 }
 0x119   : > { %v753_v10 = vadd.f32 %v752_v12, %v722_v3 }
 0x11b   : > { %v754_v16 = vadd.f32 %v753_v10, %v723_v13 }
 0x11d   : > { %v755_v20 = vadd.f32 %v754_v16, %v724_v17 }
 0x11f   : > { %v756_v22 = vadd.f32 %v755_v20, %v725_v5 }
 0x121   : > { %v757_v27 = vadd.f32 %v756_v22, %v726_v21 }
 0x123   : > { %v758_v19 = vadd.f32 %v757_v27, %v727_v23 }
 0x125   : > { %v759_v31 = vadd.f32 %v758_v19, %v728_v30 }
 0x127   : > { %v760_v34 = vadd.f32 %v759_v31, %v729_v25 }
 0x129   : > { %v761_v35 = vadd.f32 %v760_v34, %v730_v33 }
 0x12b   : > { %v762_v36 = vrot.slane %v761_v35, 4 }
 0x12d   : > { %v763_v37 = vadd.f32 %v762_v36, %v761_v35 }
 0x12f   : > { %v764_v38 = vrot.slane %v763_v37, 2 }
 0x131   : > { %v765_v39 = vadd.f32 %v764_v38, %v763_v37 }
 0x133   : > { %v766_v40 = vrot.slane %v765_v39, 1 }
 0x135   : > { %v767_v41 = vadd.f32 %v766_v40, %v765_v39 }
 0x137   : > { %v769_v44 = vmul.f32 0.00390625, %v767_v41 }
 0x139   : > { %v770_v46 = vpack.c.bf16 %v769_v44, %v769_v44 }
 0x13b   : > { %1446 = vmatmul.mubr.bf16.vlgmr.msra.gmra.mrb[16].mxu1 %v770_v46 }
 0x13c   : > { %1450 = vmatpush3.bf16.msra.mxu1 %v1705_v28  ;;  %1451 = vmatprep.mubr.msk.bf16.mxu1 %vm888_vm3, %v883_v45  ;;  %v1528_v28 = vld [vmem:[%s1805_s7 + $0x20] sm:$0xff]  }
 0x13d   : > { %1467 = vmatprep.subr.bf16.mxu0 %v1528_v28 }
 0x13e   : > { %1468 = vmatpush3.bf16.msra.mxu0 %v1528_v28 }
 0x13f   : > { %1469 = vmatprep.subr.bf16.mxu0 %v1529_v47 }
 0x142   : > { %1470 = vmatpush3.bf16.msra.mxu0 %v1529_v47 }
 0x143   : > { %1452 = vmatmul.mubr.msk.bf16.vlgmr.msra.gmra.mrb[20].mxu1 %vm888_vm3, %v884_v53  ;;  %1471 = vmatprep.subr.bf16.mxu0 %v1530_v60 }
 0x144   : > { %1455 = vmatprep.mubr.msk.bf16.mxu1 %vm888_vm3, %v885_v55 }
 0x146   : > { %1472 = vmatpush3.bf16.msra.mxu0 %v1530_v60 }
 0x147   : > { %1473 = vmatprep.subr.bf16.mxu0 %v1531_v61 }
 0x14a   : > { %1474 = vmatpush3.bf16.msra.mxu0 %v1531_v61 }
 0x14b   : > { %1456 = vmatmul.mubr.msk.bf16.gmra.mrb[24].mxu1 %vm888_vm3, %v886_v58 }
 0x20e   : > { %v869_v1 = vpop.f32.mrb[16].mxu1 }
 0x20f   : > { %v1447_v2 = vpop.f32.mrb[17].mxu1  ;;  %v973_v43 = vrot.slane %v869_v1, %v972_v54 }
 0x210   : > { %v872_v4 = vpop.f32.mrb[18].mxu1 }
 0x211   : > { %v1448_v6 = vpop.f32.mrb[19].mxu1 }
 0x216   : > { %v1453_v7 = vpop.f32.mrb[20].mxu1 }
 0x217   : > { %v976_v49 = vadd.f32 %v1453_v7, %v973_v43  ;;  %v939_v9 = vpop.f32.mrb[21].mxu1 }
 0x218   : > { %v974_v11 = vadd.f32 %v973_v43, %v939_v9  ;;  %v1454_v3 = vpop.f32.mrb[22].mxu1 }
 0x219   : > { %v991_v12 = vadd.f32 %v1326_v8, %v976_v49  ;;  %v977_v13 = vadd.f32 %v1454_v3, %v973_v43  ;;  %v942_v14 = vpop.f32.mrb[23].mxu1 }
 0x21a   : > { %v989_v15 = vadd.f32 %v1326_v8, %v974_v11  ;;  %v975_v10 = vadd.f32 %v973_v43, %v942_v14 }
 0x21b   : > { %v992_v16 = vadd.f32 %v1326_v8, %v977_v13  ;;  %v999_v17 = vmax.f32 %v991_v12, 0.0 }
 0x21c   : > { %v990_v63 = vadd.f32 %v1326_v8, %v975_v10  ;;  %v997_v5 = vmax.f32 %v989_v15, 0.0 }
 0x21d   : > { %v1000_v18 = vmax.f32 %v992_v16, 0.0 }
 0x21e   : > { %v998_v20 = vmax.f32 %v990_v63, 0.0  ;;  %v1457_v21 = vpop.f32.mrb[24].mxu1 }
 0x21f   : > { %v1006_v22 = vpack.c.bf16 %v1000_v18, %v999_v17  ;;  %v980_v23 = vadd.f32 %v1457_v21, %v973_v43  ;;  %v955_v24 = vpop.f32.mrb[25].mxu1 }
 0x220   : > { %v978_v26 = vadd.f32 %v973_v43, %v955_v24  ;;  %v1458_v27 = vpop.f32.mrb[26].mxu1  ;;  %v1005_v19 = vpack.c.bf16 %v998_v20, %v997_v5 }
 0x221   : > { %v995_v29 = vadd.f32 %v1326_v8, %v980_v23  ;;  %v981_v30 = vadd.f32 %v1458_v27, %v973_v43  ;;  %v958_v25 = vpop.f32.mrb[27].mxu1 }
 0x222   : > { %v993_v31 = vadd.f32 %v1326_v8, %v978_v26  ;;  %v979_v33 = vadd.f32 %v973_v43, %v958_v25  ;;  %1475 = vmatprep.mubr.bf16.mxu0 %v1005_v19 }
 0x223   : > { %v996_v34 = vadd.f32 %v1326_v8, %v981_v30  ;;  %1476 = vmatmul.mubr.bf16.vlgmr.msra.gmra.mrb[16].mxu0 %v1006_v22  ;;  %v1003_v36 = vmax.f32 %v995_v29, 0.0 }
 0x224   : > { %v994_v35 = vadd.f32 %v1326_v8, %v979_v33  ;;  %v1001_v38 = vmax.f32 %v993_v31, 0.0 }
 0x225   : > { %v1004_v37 = vmax.f32 %v996_v34, 0.0 }
 0x226   : > { %v1002_v39 = vmax.f32 %v994_v35, 0.0 }
 0x227   : > { %v1008_v40 = vpack.c.bf16 %v1004_v37, %v1003_v36 }
 0x228   : > { %v1007_v41 = vpack.c.bf16 %v1002_v39, %v1001_v38 }
 0x22a   : > { %1479 = vmatprep.mubr.bf16.mxu0 %v1007_v41 }
 0x22b   : > { %1480 = vmatmul.mubr.bf16.gmra.mrb[20].mxu0 %v1008_v40 }
 0x2f6   : > { %v1477_v32 = vpop.f32.mrb[16].mxu0 }
 0x2f7   : > { %v1123_v44 = vadd.f32 %v1477_v32, %v1327_v42  ;;  %v1114_v45 = vpop.f32.mrb[17].mxu0 }
 0x2f8   : > { %v1115_v46 = vadd.f32 %v1327_v42, %v1114_v45  ;;  %v1478_v48 = vpop.f32.mrb[18].mxu0 }
 0x2f9   : > { %v1338_v50 = vmul.f32 -1.442695, %v1123_v44  ;;  %v1126_v51 = vadd.f32 %v1478_v48, %v1327_v42  ;;  %v1117_v52 = vpop.f32.mrb[19].mxu0 }
 0x2fa   : > { %v1336_v53 = vmul.f32 -1.442695, %v1115_v46  ;;  %v1118_v55 = vadd.f32 %v1327_v42, %v1117_v52 }
 0x2fb   : > { %1532 = vpow2.f32 %v1338_v50  ;;  %v1339_v56 = vmul.f32 -1.442695, %v1126_v51 }
 0x2fc   : > { %1534 = vpow2.f32 %v1336_v53  ;;  %v1337_v57 = vmul.f32 -1.442695, %v1118_v55 }
 0x2fd   : > { %1536 = vpow2.f32 %v1339_v56 }
 0x2fe   : > { %1538 = vpow2.f32 %v1337_v57  ;;  %v1481_v58 = vpop.f32.mrb[20].mxu0 }
 0x2ff   : > { %v1139_v59 = vadd.f32 %v1481_v58, %v1327_v42  ;;  %v1130_v28 = vpop.f32.mrb[21].mxu0 }
 0x300   : > { %v1131_v47 = vadd.f32 %v1327_v42, %v1130_v28  ;;  %v1482_v60 = vpop.f32.mrb[22].mxu0 }
 0x301   : > { %v1342_v61 = vmul.f32 -1.442695, %v1139_v59  ;;  %v1142_v62 = vadd.f32 %v1482_v60, %v1327_v42  ;;  %v1133_v0 = vpop.f32.mrb[23].mxu0 }
 0x302   : > { %v1340_v1 = vmul.f32 -1.442695, %v1131_v47  ;;  %v1134_v2 = vadd.f32 %v1327_v42, %v1133_v0 }
 0x303   : > { %1540 = vpow2.f32 %v1342_v61  ;;  %v1343_v4 = vmul.f32 -1.442695, %v1142_v62 }
 0x304   : > { %1542 = vpow2.f32 %v1340_v1  ;;  %v1341_v54 = vmul.f32 -1.442695, %v1134_v2 }
 0x305   : > { %v1533_v6 = vpop.eup %1532  ;;  %1544 = vpow2.f32 %v1343_v4 }
 0x306   : > { %v1535_v43 = vpop.eup %1534  ;;  %v1171_v7 = vadd.f32 1.0, %v1533_v6  ;;  %1546 = vpow2.f32 %v1341_v54 }
 0x307   : > { %v1537_v8 = vpop.eup %1536  ;;  %v1169_v49 = vadd.f32 1.0, %v1535_v43 }
 0x308   : > { %v1539_v9 = vpop.eup %1538  ;;  %1548 = vrcp.f32 %v1171_v7  ;;  %v1172_v11 = vadd.f32 1.0, %v1537_v8 }
 0x309   : > { %1550 = vrcp.f32 %v1169_v49  ;;  %v1170_v3 = vadd.f32 1.0, %v1539_v9 }
 0x30a   : > { %1552 = vrcp.f32 %v1172_v11 }
 0x30b   : > { %1554 = vrcp.f32 %v1170_v3 }
 0x30d   : > { %v1541_v12 = vpop.eup %1540 }
 0x30e   : > { %v1543_v13 = vpop.eup %1542  ;;  %v1175_v14 = vadd.f32 1.0, %v1541_v12 }
 0x30f   : > { %v1545_v15 = vpop.eup %1544  ;;  %v1173_v10 = vadd.f32 1.0, %v1543_v13 }
 0x310   : > { %v1547_v16 = vpop.eup %1546  ;;  %1556 = vrcp.f32 %v1175_v14  ;;  %v1176_v63 = vadd.f32 1.0, %v1545_v15 }
 0x311   : > { %1558 = vrcp.f32 %v1173_v10  ;;  %v1174_v17 = vadd.f32 1.0, %v1547_v16 }
 0x312   : > { %v1549_v18 = vpop.eup %1548  ;;  %1560 = vrcp.f32 %v1176_v63 }
 0x313   : > { %v1551_v5 = vpop.eup %1550  ;;  %1195 = vst [vmem:[%s352_s28 + $0x10] sm:$0xff] %v1549_v18  ;;  %1562 = vrcp.f32 %v1174_v17 }
 0x314   : > { %v1553_v20 = vpop.eup %1552  ;;  %1193 = vst [vmem:[%s352_s28] sm:$0xff] %v1551_v5 }
 0x315   : > { %v1555_v21 = vpop.eup %1554  ;;  %1196 = vst [vmem:[%s352_s28 + $0x18] sm:$0xff] %v1553_v20 }
 0x316   : > { %1194 = vst [vmem:[%s352_s28 + $0x8] sm:$0xff] %v1555_v21 }
 0x31a   : > { %v1557_v22 = vpop.eup %1556 }
 0x31b   : > { %v1559_v23 = vpop.eup %1558  ;;  %1199 = vst [vmem:[%s352_s28 + $0x30] sm:$0xff] %v1557_v22 }
 0x31c   : > { %v1561_v24 = vpop.eup %1560  ;;  %1197 = vst [vmem:[%s352_s28 + $0x20] sm:$0xff] %v1559_v23 }
 0x31d   : > { %v1563_v26 = vpop.eup %1562  ;;  %1200 = vst [vmem:[%s352_s28 + $0x38] sm:$0xff] %v1561_v24 }
 0x31e   : > { %1198 = vst [vmem:[%s352_s28 + $0x28] sm:$0xff] %v1563_v26 }
 0x31f PF: > { %s19_s30 = sadd.s32 1, %s1570_s30  }
 0x320   : > { %p16_p4 = scmp.ge.s32.totalorder %s19_s30, 4  }
 0x322   :  { %18 = sbr.rel (!%p16_p4) target bundleno = 1 (0x1), region = 89 }

</bundles_post_ra>
